<compile_context>
chip_gen: v7x
topology: tpu7x:2x2x1
jax: 0.10.0
libtpu: 0.0.40
codegen_flags: <defaults>
</compile_context>

<pallas_src>
import math
import functools

import jax
import jax.numpy as jnp
from jax.experimental import pallas as pl
from jax.experimental.pallas import tpu as pltpu


# ----------------------------------------------------------------------------
# Fused layer kernel (per token tile):
#   x [R, D] -> mh linear -> per-head (d-wide slice): router top-k / sparse
#   softmax / z-loss -> stacked-expert GLU -> gated stacked W_out -> merge
#   linear rows for that head accumulated into out [R, D]
# ----------------------------------------------------------------------------
def _make_layer_kernel(H, E, d, top_k):
    D = H * d
    Ed = E * d
    NEG_INF = float("-inf")

    def kernel(x_ref, mh_w_ref, mh_b_ref, r_w_ref, r_b_ref,
               w_in_ref, bvec_ref, gexp_ref, w_out_ref, b_out_ref,
               mg_w_ref, mg_b_ref, o_ref, z_ref):
        R = x_ref.shape[0]

        # ---- multi-head linear: one wide MXU matmul (bf16 operands, f32 acc) ----
        h = jnp.dot(x_ref[...], mh_w_ref[...],
                    preferred_element_type=jnp.float32) + mh_b_ref[...]   # [R, D] f32

        # compact shared weights, loaded once per tile
        r_w = r_w_ref[...]        # [d, E]      bf16
        r_b = r_b_ref[...]        # [1, E]      f32
        w_in = w_in_ref[...]      # [d, 2*E*d]  bf16
        bvec = bvec_ref[...]      # [1, E*d]    f32
        gexp = gexp_ref[...]      # [E, E*d]    bf16 (0/1 -> exact)
        w_out = w_out_ref[...]    # [E*d, d]    bf16
        b_out = b_out_ref[...]    # [E, d]      bf16
        mg_w = mg_w_ref[...]      # [D, D]      bf16

        col = jax.lax.broadcasted_iota(jnp.int32, (R, E), 1)
        acc = jnp.zeros((R, D), jnp.float32)
        z_tok = jnp.zeros((R, 1), jnp.float32)

        # ---- per-head loop on the d-wide column slice of h (no kron zeros) ----
        # H and top_k are tiny here; switch to lax.fori_loop(..., unroll=True)
        # once H * top_k grows beyond a handful of iterations.
        for hh in range(H):
            h_h = h[:, hh * d:(hh + 1) * d].astype(jnp.bfloat16)          # [R, d]

            # router logits for this head (shared router weights)
            logits = jnp.dot(h_h, r_w,
                             preferred_element_type=jnp.float32) + r_b    # [R, E]

            # top-k + sparse softmax (unmasked, width E)
            work = logits
            sel = jnp.zeros((R, E), jnp.bool_)
            for _ in range(top_k):
                mx = jnp.max(work, axis=-1, keepdims=True)
                # first occurrence among ties (matches torch.topk ordering)
                first = jnp.min(jnp.where(work == mx, col, E),
                                axis=-1, keepdims=True)
                pick = col == first
                sel = jnp.logical_or(sel, pick)
                work = jnp.where(pick, NEG_INF, work)
            sparse = jnp.where(sel, logits, NEG_INF)
            m = jnp.max(sparse, axis=-1, keepdims=True)
            p = jnp.where(sel, jnp.exp(sparse - m), 0.0)
            s = jnp.sum(p, axis=-1, keepdims=True)
            gates = p * pl.reciprocal(s, approx=True)                     # EUP divide
            lse = m + jnp.log(s)
            z_tok = z_tok + lse * lse

            # all E experts of this head at once: GLU
            hall = jnp.dot(h_h, w_in, preferred_element_type=jnp.float32)  # [R, 2*E*d]
            y = (jax.nn.gelu(hall[:, :Ed], approximate=True)
                 * hall[:, Ed:] * bvec)                                     # [R, E*d] f32

            # gate each expert's d-wide column block (bf16 0/1 lane expansion)
            gates_b = gates.astype(jnp.bfloat16)
            gsel = jnp.dot(gates_b, gexp, preferred_element_type=jnp.float32)
            yg = (y * gsel).astype(jnp.bfloat16)

            # stacked expert output matmul + gated output bias
            moe = jnp.dot(yg, w_out, preferred_element_type=jnp.float32)   # [R, d]
            moe = moe + jnp.dot(gates_b, b_out,
                                preferred_element_type=jnp.float32)

            # merge linear folded per head: out += moe_h @ merge_w[h*d:(h+1)*d, :]
            acc = acc + jnp.dot(moe.astype(jnp.bfloat16),
                                mg_w[hh * d:(hh + 1) * d, :],
                                preferred_element_type=jnp.float32)

        o_ref[...] = (acc + mg_b_ref[...]).astype(o_ref.dtype)
        z_ref[...] = z_tok                       # per-token z partials (summed outside)

    return kernel


def _pick_tile(m, cap=512):
    """Largest multiple-of-8 divisor of m (<= cap); prefer >= 2 grid steps (megacore)."""
    cands = [t for t in range(8, min(cap, m) + 1, 8) if m % t == 0]
    multi = [t for t in cands if m // t >= 2]
    if multi:
        return max(multi)
    if cands:
        return max(cands)
    return m


def _pack_layer(p):
    """Compact shared weights (experts/router are shared across heads -> no kron)."""
    d = 32
    E = p["router_w"].shape[1]
    bf = jnp.bfloat16
    f32 = jnp.float32

    w1 = p["w_in"][:, :, :d]                                     # [E, d, d] -> x1
    w2 = p["w_in"][:, :, d:]                                     # [E, d, d] -> x2
    w1_cat = jnp.transpose(w1, (1, 0, 2)).reshape(d, E * d)
    w2_cat = jnp.transpose(w2, (1, 0, 2)).reshape(d, E * d)
    w_in_c = jnp.concatenate([w1_cat, w2_cat], axis=1)           # [d, 2*E*d]
    w_out_c = p["w_out"].reshape(E * d, d)                       # [E*d, d]
    # 0/1 matrix expanding gates [., E] -> [., E*d]; exact in bf16
    gexp = jnp.repeat(jnp.eye(E, dtype=f32), d, axis=1)

    return dict(
        mh_w=p["mh_w"].astype(bf), mh_b=p["mh_b"].reshape(1, -1).astype(f32),
        r_w=p["router_w"].astype(bf), r_b=p["router_b"].reshape(1, -1).astype(f32),
        w_in=w_in_c.astype(bf), bvec=p["bvec"].reshape(1, E * d).astype(f32),
        gexp=gexp.astype(bf), w_out=w_out_c.astype(bf), b_out=p["b_out"].astype(bf),
        mg_w=p["merge_w"].astype(bf), mg_b=p["merge_b"].reshape(1, -1).astype(f32),
    )


def process_layer(x, p, top_k):
    B, T, D = x.shape
    assert D % 32 == 0
    d = 32
    H = D // d
    E = p["router_w"].shape[1]
    M = B * T
    Ed = E * d

    w = _pack_layer(p)
    TILE = _pick_tile(M)
    grid = (M // TILE,)
    kernel = _make_layer_kernel(H, E, d, top_k)

    # explicit scoped-VMEM budget (review): compact weights + double-buffered
    # tiles + headroom, kept well under v7x's 64 MiB physical VMEM.
    weight_bytes = sum(int(a.size) * a.dtype.itemsize for a in w.values())
    tile_bytes = TILE * (D * (2 + 4) + 4)        # bf16 x tile + f32 out tile + z
    vmem_limit = int(min(max(4 * (weight_bytes + tile_bytes) + (16 << 20), 32 << 20),
                         48 << 20))

    out_flat, z_tok = pl.pallas_call(
        kernel,
        out_shape=(jax.ShapeDtypeStruct((M, D), jnp.float32),
                   jax.ShapeDtypeStruct((M, 1), jnp.float32)),
        grid_spec=pltpu.PrefetchScalarGridSpec(
            num_scalar_prefetch=0,
            grid=grid,
            in_specs=[
                pl.BlockSpec((TILE, D), lambda i: (i, 0)),        # x tile (bf16)
                pl.BlockSpec((D, D), lambda i: (0, 0)),           # mh_w
                pl.BlockSpec((1, D), lambda i: (0, 0)),           # mh_b
                pl.BlockSpec((d, E), lambda i: (0, 0)),           # router_w (shared)
                pl.BlockSpec((1, E), lambda i: (0, 0)),           # router_b
                pl.BlockSpec((d, 2 * Ed), lambda i: (0, 0)),      # W_in (GLU, stacked experts)
                pl.BlockSpec((1, Ed), lambda i: (0, 0)),          # expert bias vec
                pl.BlockSpec((E, Ed), lambda i: (0, 0)),          # gate lane-expansion (bf16 0/1)
                pl.BlockSpec((Ed, d), lambda i: (0, 0)),          # W_out (stacked experts)
                pl.BlockSpec((E, d), lambda i: (0, 0)),           # expert out bias (bf16)
                pl.BlockSpec((D, D), lambda i: (0, 0)),           # merge_w
                pl.BlockSpec((1, D), lambda i: (0, 0)),           # merge_b
            ],
            out_specs=(pl.BlockSpec((TILE, D), lambda i: (i, 0)),
                       pl.BlockSpec((TILE, 1), lambda i: (i, 0))),
        ),
        # token tiles are independent (z-loss is per-token partials) ->
        # megacore-shardable on v7x; harmless on v5e/v6e.
        compiler_params=pltpu.CompilerParams(
            dimension_semantics=("parallel",),
            vmem_limit_bytes=vmem_limit),
    )(x.reshape(M, D).astype(jnp.bfloat16),
      w["mh_w"], w["mh_b"], w["r_w"], w["r_b"],
      w["w_in"], w["bvec"], w["gexp"], w["w_out"], w["b_out"],
      w["mg_w"], w["mg_b"])

    z_loss = jnp.sum(z_tok) / (M * H)
    return out_flat.reshape(B, T, D), z_loss


@functools.partial(jax.jit, static_argnums=(2,))
def sparse_moe_forward(x, params, top_k):
    loss = jnp.float32(0.0)
    for p in params:
        x, z = process_layer(x, p, top_k)
        loss = loss + z
    return x, loss / len(params)


# ----------------------------------------------------------------------------
# Parameter init (matches the torch module's shapes; eval-mode semantics)
# ----------------------------------------------------------------------------
def init_params(key, dim, num_experts, num_layers):
    d = 32
    params = []
    for _ in range(num_layers):
        key, *ks = jax.random.split(key, 9)
        params.append(dict(
            mh_w=jax.random.normal(ks[0], (dim, dim), jnp.float32) / math.sqrt(dim),
            mh_b=jax.random.normal(ks[1], (dim,), jnp.float32) * 0.02,
            merge_w=jax.random.normal(ks[2], (dim, dim), jnp.float32) / math.sqrt(dim),
            merge_b=jnp.zeros((dim,), jnp.float32),          # per nn.init.constant_
            router_w=jax.random.normal(ks[3], (d, num_experts), jnp.float32) / math.sqrt(d),
            router_b=jax.random.normal(ks[4], (num_experts,), jnp.float32) * 0.02,
            w_in=jax.random.normal(ks[5], (num_experts, d, 2 * d), jnp.float32) / math.sqrt(d),
            bvec=jnp.ones((num_experts, d), jnp.float32),    # per torch.ones init
            w_out=jax.random.normal(ks[6], (num_experts, d, d), jnp.float32) / math.sqrt(d),
            b_out=jax.random.normal(ks[7], (num_experts, d), jnp.float32) * 0.02,
        ))
    return params


# ----------------------------------------------------------------------------
# Pure-JAX reference (same bf16-operand / f32-accumulation matmul strategy as
# the kernel so the numeric check is tight and deterministic).
# ----------------------------------------------------------------------------
def _moe_head_ref(tok, p, top_k):
    E = p["router_w"].shape[1]
    bf = jnp.bfloat16
    tb = tok.astype(bf)
    logits = jnp.dot(tb, p["router_w"].astype(bf),
                     preferred_element_type=jnp.float32) + p["router_b"]
    _, topi = jax.lax.top_k(logits, top_k)
    sel = jnp.sum(jax.nn.one_hot(topi, E, dtype=jnp.float32), axis=-2) > 0
    sparse = jnp.where(sel, logits, -jnp.inf)
    gates = jax.nn.softmax(sparse, axis=-1)
    lse = jax.scipy.special.logsumexp(sparse, axis=-1)
    zsum = jnp.sum(lse ** 2)
    out = jnp.zeros_like(tok)
    for e in range(E):
        h = jnp.dot(tb, p["w_in"][e].astype(bf), preferred_element_type=jnp.float32)
        y = jax.nn.gelu(h[:, :32], approximate=True) * h[:, 32:] * p["bvec"][e]
        oe = jnp.dot(y.astype(bf), p["w_out"][e].astype(bf),
                     preferred_element_type=jnp.float32) + p["b_out"][e]
        out = out + gates[:, e:e + 1] * oe
    return out, zsum


def _forward_ref(x, params, top_k):
    bf = jnp.bfloat16
    loss = 0.0
    for p in params:
        B, T, D = x.shape
        H = D // 32
        h = jnp.dot(x.reshape(B * T, D).astype(bf), p["mh_w"].astype(bf),
                    preferred_element_type=jnp.float32) + p["mh_b"]
        h = h.reshape(B, T, H, 32).transpose(0, 2, 1, 3).reshape(B * H * T, 32)
        y, zsum = _moe_head_ref(h, p, top_k)
        z = zsum / (B * H * T)
        y = y.reshape(B, H, T, 32).transpose(0, 2, 1, 3).reshape(B * T, 32 * H)
        x = (jnp.dot(y.astype(bf), p["merge_w"].astype(bf),
                     preferred_element_type=jnp.float32) + p["merge_b"]).reshape(B, T, D)
        loss = loss + z
    return x, loss / len(params)


# ----------------------------------------------------------------------------
if __name__ == "__main__":
    dim = 64          # -> heads = dim // 32 = 2
    B, T = 2, 8       # batch, n_patches (sequence length)
    num_experts = 8
    top_k = 2
    num_layers = 1

    key = jax.random.PRNGKey(0)
    kx, kp = jax.random.split(key)
    x = jax.random.normal(kx, (B, T, dim), jnp.float32)
    params = init_params(kp, dim, num_experts, num_layers)

    out, loss = sparse_moe_forward(x, params, top_k)
    out = jax.block_until_ready(out)
    loss = jax.block_until_ready(loss)

    ref_out, ref_loss = _forward_ref(x, params, top_k)
    assert out.shape == (B, T, dim)
    assert bool(jnp.all(jnp.isfinite(out))) and bool(jnp.isfinite(loss))
    # bf16 MXU operands (f32 accumulation) in both kernel and reference;
    # residual difference comes from op-ordering, bf16 gates and approx recip.
    assert jnp.allclose(out, ref_out, atol=2e-2, rtol=2e-2)
    assert jnp.allclose(loss, ref_loss, atol=1e-2, rtol=1e-2)

    print("KERNEL_OK")
</pallas_src>

<mosaic_0001>
module attributes {stable_mosaic.version = 11 : i64} {
  func.func @kernel(%arg0: i32, %arg1: memref<8x64xbf16, #tpu.memory_space<vmem>>, %arg2: memref<64x64xbf16, #tpu.memory_space<vmem>>, %arg3: memref<1x64xf32, #tpu.memory_space<vmem>>, %arg4: memref<32x8xbf16, #tpu.memory_space<vmem>>, %arg5: memref<1x8xf32, #tpu.memory_space<vmem>>, %arg6: memref<32x512xbf16, #tpu.memory_space<vmem>>, %arg7: memref<1x256xf32, #tpu.memory_space<vmem>>, %arg8: memref<8x256xbf16, #tpu.memory_space<vmem>>, %arg9: memref<256x32xbf16, #tpu.memory_space<vmem>>, %arg10: memref<8x32xbf16, #tpu.memory_space<vmem>>, %arg11: memref<64x64xbf16, #tpu.memory_space<vmem>>, %arg12: memref<1x64xf32, #tpu.memory_space<vmem>>, %arg13: memref<8x64xf32, #tpu.memory_space<vmem>>, %arg14: memref<8x1xf32, #tpu.memory_space<vmem>>) attributes {dimension_semantics = [#tpu.dimension_semantics<parallel>], iteration_bounds = array<i64: 2>, scalar_prefetch = 0 : i64, scratch_operands = 0 : i64, tpu.core_type = #tpu.core_type<tc>, window_params = [{transform_indices = @transform_0, window_bounds = array<i64: 8, 64>}, {pipeline_mode = #tpu.pipeline_mode<synchronous>, transform_indices = @transform_1, window_bounds = array<i64: 64, 64>}, {pipeline_mode = #tpu.pipeline_mode<synchronous>, transform_indices = @transform_2, window_bounds = array<i64: 1, 64>}, {pipeline_mode = #tpu.pipeline_mode<synchronous>, transform_indices = @transform_3, window_bounds = array<i64: 32, 8>}, {pipeline_mode = #tpu.pipeline_mode<synchronous>, transform_indices = @transform_4, window_bounds = array<i64: 1, 8>}, {pipeline_mode = #tpu.pipeline_mode<synchronous>, transform_indices = @transform_5, window_bounds = array<i64: 32, 512>}, {pipeline_mode = #tpu.pipeline_mode<synchronous>, transform_indices = @transform_6, window_bounds = array<i64: 1, 256>}, {pipeline_mode = #tpu.pipeline_mode<synchronous>, transform_indices = @transform_7, window_bounds = array<i64: 8, 256>}, {pipeline_mode = #tpu.pipeline_mode<synchronous>, transform_indices = @transform_8, window_bounds = array<i64: 256, 32>}, {pipeline_mode = #tpu.pipeline_mode<synchronous>, transform_indices = @transform_9, window_bounds = array<i64: 8, 32>}, {pipeline_mode = #tpu.pipeline_mode<synchronous>, transform_indices = @transform_10, window_bounds = array<i64: 64, 64>}, {pipeline_mode = #tpu.pipeline_mode<synchronous>, transform_indices = @transform_11, window_bounds = array<i64: 1, 64>}, {transform_indices = @transform_12, window_bounds = array<i64: 8, 64>}, {transform_indices = @transform_13, window_bounds = array<i64: 8, 1>}]} {
    %c0 = arith.constant 0 : index
    %c0_0 = arith.constant 0 : index
    %0 = vector.load %arg1[%c0, %c0_0] : memref<8x64xbf16, #tpu.memory_space<vmem>>, vector<8x64xbf16>
    %c0_1 = arith.constant 0 : index
    %c0_2 = arith.constant 0 : index
    %1 = vector.load %arg2[%c0_1, %c0_2] : memref<64x64xbf16, #tpu.memory_space<vmem>>, vector<64x64xbf16>
    %cst = arith.constant dense<0.000000e+00> : vector<8x64xf32>
    %2 = tpu.matmul %0, %1, %cst {dimension_numbers = #tpu.dot_dimension_numbers<[1], [0], [0], [1], [0, 0, 1, 1], [], []>} : vector<8x64xbf16>, vector<64x64xbf16>, vector<8x64xf32> -> vector<8x64xf32>
    %c0_3 = arith.constant 0 : index
    %c0_4 = arith.constant 0 : index
    %3 = vector.load %arg3[%c0_3, %c0_4] : memref<1x64xf32, #tpu.memory_space<vmem>>, vector<1x64xf32>
    %4 = vector.broadcast %3 : vector<1x64xf32> to vector<8x64xf32>
    %5 = arith.addf %2, %4 : vector<8x64xf32>
    %c0_5 = arith.constant 0 : index
    %c0_6 = arith.constant 0 : index
    %6 = vector.load %arg4[%c0_5, %c0_6] : memref<32x8xbf16, #tpu.memory_space<vmem>>, vector<32x8xbf16>
    %c0_7 = arith.constant 0 : index
    %c0_8 = arith.constant 0 : index
    %7 = vector.load %arg5[%c0_7, %c0_8] : memref<1x8xf32, #tpu.memory_space<vmem>>, vector<1x8xf32>
    %c0_9 = arith.constant 0 : index
    %c0_10 = arith.constant 0 : index
    %8 = vector.load %arg6[%c0_9, %c0_10] : memref<32x512xbf16, #tpu.memory_space<vmem>>, vector<32x512xbf16>
    %c0_11 = arith.constant 0 : index
    %c0_12 = arith.constant 0 : index
    %9 = vector.load %arg7[%c0_11, %c0_12] : memref<1x256xf32, #tpu.memory_space<vmem>>, vector<1x256xf32>
    %c0_13 = arith.constant 0 : index
    %c0_14 = arith.constant 0 : index
    %10 = vector.load %arg8[%c0_13, %c0_14] : memref<8x256xbf16, #tpu.memory_space<vmem>>, vector<8x256xbf16>
    %c0_15 = arith.constant 0 : index
    %c0_16 = arith.constant 0 : index
    %11 = vector.load %arg9[%c0_15, %c0_16] : memref<256x32xbf16, #tpu.memory_space<vmem>>, vector<256x32xbf16>
    %c0_17 = arith.constant 0 : index
    %c0_18 = arith.constant 0 : index
    %12 = vector.load %arg10[%c0_17, %c0_18] : memref<8x32xbf16, #tpu.memory_space<vmem>>, vector<8x32xbf16>
    %c0_19 = arith.constant 0 : index
    %c0_20 = arith.constant 0 : index
    %13 = vector.load %arg11[%c0_19, %c0_20] : memref<64x64xbf16, #tpu.memory_space<vmem>>, vector<64x64xbf16>
    %14 = tpu.iota {dimensions = array<i32: 1>} : vector<8x8xi32>
    %cst_21 = arith.constant 0.000000e+00 : f32
    %15 = vector.broadcast %cst_21 : f32 to vector<8x64xf32>
    %cst_22 = arith.constant 0.000000e+00 : f32
    %16 = vector.broadcast %cst_22 : f32 to vector<8x1xf32>
    %17 = vector.extract_strided_slice %5 {offsets = [0, 0], sizes = [8, 32], strides = [1, 1]} : vector<8x64xf32> to vector<8x32xf32>
    %18 = arith.truncf %17 : vector<8x32xf32> to vector<8x32xbf16>
    %cst_23 = arith.constant dense<0.000000e+00> : vector<8x8xf32>
    %19 = tpu.matmul %18, %6, %cst_23 {dimension_numbers = #tpu.dot_dimension_numbers<[1], [0], [0], [1], [0, 0, 1, 1], [], []>} : vector<8x32xbf16>, vector<32x8xbf16>, vector<8x8xf32> -> vector<8x8xf32>
    %20 = vector.broadcast %7 : vector<1x8xf32> to vector<8x8xf32>
    %21 = arith.addf %19, %20 : vector<8x8xf32>
    %false = arith.constant false
    %22 = vector.broadcast %false : i1 to vector<8x8xi1>
    %cst_24 = arith.constant dense<0xFF800000> : vector<8xf32>
    %23 = vector.multi_reduction <maximumf>, %21, %cst_24 [1] : vector<8x8xf32> to vector<8xf32>
    %24 = vector.shape_cast %23 : vector<8xf32> to vector<8x1xf32>
    %25 = vector.broadcast %24 : vector<8x1xf32> to vector<8x8xf32>
    %26 = arith.cmpf oeq, %21, %25 : vector<8x8xf32>
    %c8_i32 = arith.constant 8 : i32
    %27 = vector.broadcast %c8_i32 : i32 to vector<8x8xi32>
    %28 = arith.select %26, %14, %27 : vector<8x8xi1>, vector<8x8xi32>
    %cst_25 = arith.constant dense<2147483647> : vector<8xi32>
    %29 = vector.multi_reduction <minsi>, %28, %cst_25 [1] : vector<8x8xi32> to vector<8xi32>
    %30 = vector.shape_cast %29 : vector<8xi32> to vector<8x1xi32>
    %31 = vector.broadcast %30 : vector<8x1xi32> to vector<8x8xi32>
    %32 = arith.cmpi eq, %14, %31 : vector<8x8xi32>
    %33 = arith.ori %22, %32 : vector<8x8xi1>
    %cst_26 = arith.constant 0xFF800000 : f32
    %34 = vector.broadcast %cst_26 : f32 to vector<8x8xf32>
    %35 = arith.select %32, %34, %21 : vector<8x8xi1>, vector<8x8xf32>
    %cst_27 = arith.constant dense<0xFF800000> : vector<8xf32>
    %36 = vector.multi_reduction <maximumf>, %35, %cst_27 [1] : vector<8x8xf32> to vector<8xf32>
    %37 = vector.shape_cast %36 : vector<8xf32> to vector<8x1xf32>
    %38 = vector.broadcast %37 : vector<8x1xf32> to vector<8x8xf32>
    %39 = arith.cmpf oeq, %35, %38 : vector<8x8xf32>
    %c8_i32_28 = arith.constant 8 : i32
    %40 = vector.broadcast %c8_i32_28 : i32 to vector<8x8xi32>
    %41 = arith.select %39, %14, %40 : vector<8x8xi1>, vector<8x8xi32>
    %cst_29 = arith.constant dense<2147483647> : vector<8xi32>
    %42 = vector.multi_reduction <minsi>, %41, %cst_29 [1] : vector<8x8xi32> to vector<8xi32>
    %43 = vector.shape_cast %42 : vector<8xi32> to vector<8x1xi32>
    %44 = vector.broadcast %43 : vector<8x1xi32> to vector<8x8xi32>
    %45 = arith.cmpi eq, %14, %44 : vector<8x8xi32>
    %46 = arith.ori %33, %45 : vector<8x8xi1>
    %cst_30 = arith.constant 0xFF800000 : f32
    %47 = vector.broadcast %cst_30 : f32 to vector<8x8xf32>
    %48 = arith.select %46, %21, %47 : vector<8x8xi1>, vector<8x8xf32>
    %cst_31 = arith.constant dense<0xFF800000> : vector<8xf32>
    %49 = vector.multi_reduction <maximumf>, %48, %cst_31 [1] : vector<8x8xf32> to vector<8xf32>
    %50 = vector.shape_cast %49 : vector<8xf32> to vector<8x1xf32>
    %51 = vector.broadcast %50 : vector<8x1xf32> to vector<8x8xf32>
    %52 = arith.subf %48, %51 : vector<8x8xf32>
    %53 = math.exp %52 : vector<8x8xf32>
    %cst_32 = arith.constant 0.000000e+00 : f32
    %54 = vector.broadcast %cst_32 : f32 to vector<8x8xf32>
    %55 = arith.select %46, %53, %54 : vector<8x8xi1>, vector<8x8xf32>
    %cst_33 = arith.constant dense<0.000000e+00> : vector<8xf32>
    %56 = vector.multi_reduction <add>, %55, %cst_33 [1] : vector<8x8xf32> to vector<8xf32>
    %57 = vector.shape_cast %56 : vector<8xf32> to vector<8x1xf32>
    %58 = tpu.reciprocal %57 {approx = true} : vector<8x1xf32> -> vector<8x1xf32>
    %59 = vector.broadcast %58 : vector<8x1xf32> to vector<8x8xf32>
    %60 = arith.mulf %55, %59 : vector<8x8xf32>
    %61 = math.log %57 : vector<8x1xf32>
    %62 = arith.addf %50, %61 : vector<8x1xf32>
    %63 = arith.mulf %62, %62 : vector<8x1xf32>
    %64 = arith.addf %16, %63 : vector<8x1xf32>
    %cst_34 = arith.constant dense<0.000000e+00> : vector<8x512xf32>
    %65 = tpu.matmul %18, %8, %cst_34 {dimension_numbers = #tpu.dot_dimension_numbers<[1], [0], [0], [1], [0, 0, 1, 1], [], []>} : vector<8x32xbf16>, vector<32x512xbf16>, vector<8x512xf32> -> vector<8x512xf32>
    %66 = vector.extract_strided_slice %65 {offsets = [0, 0], sizes = [8, 256], strides = [1, 1]} : vector<8x512xf32> to vector<8x256xf32>
    %67 = arith.mulf %66, %66 : vector<8x256xf32>
    %68 = arith.mulf %66, %67 : vector<8x256xf32>
    %cst_35 = arith.constant 4.471500e-02 : f32
    %69 = vector.broadcast %cst_35 : f32 to vector<8x256xf32>
    %70 = arith.mulf %69, %68 : vector<8x256xf32>
    %71 = arith.addf %66, %70 : vector<8x256xf32>
    %cst_36 = arith.constant 0.797884583 : f32
    %72 = vector.broadcast %cst_36 : f32 to vector<8x256xf32>
    %73 = arith.mulf %72, %71 : vector<8x256xf32>
    %74 = math.tanh %73 : vector<8x256xf32>
    %cst_37 = arith.constant 1.000000e+00 : f32
    %75 = vector.broadcast %cst_37 : f32 to vector<8x256xf32>
    %76 = arith.addf %75, %74 : vector<8x256xf32>
    %cst_38 = arith.constant 5.000000e-01 : f32
    %77 = vector.broadcast %cst_38 : f32 to vector<8x256xf32>
    %78 = arith.mulf %77, %76 : vector<8x256xf32>
    %79 = arith.mulf %66, %78 : vector<8x256xf32>
    %80 = vector.extract_strided_slice %65 {offsets = [0, 256], sizes = [8, 256], strides = [1, 1]} : vector<8x512xf32> to vector<8x256xf32>
    %81 = arith.mulf %79, %80 : vector<8x256xf32>
    %82 = vector.broadcast %9 : vector<1x256xf32> to vector<8x256xf32>
    %83 = arith.mulf %81, %82 : vector<8x256xf32>
    %84 = arith.truncf %60 : vector<8x8xf32> to vector<8x8xbf16>
    %cst_39 = arith.constant dense<0.000000e+00> : vector<8x256xf32>
    %85 = tpu.matmul %84, %10, %cst_39 {dimension_numbers = #tpu.dot_dimension_numbers<[1], [0], [0], [1], [0, 0, 1, 1], [], []>} : vector<8x8xbf16>, vector<8x256xbf16>, vector<8x256xf32> -> vector<8x256xf32>
    %86 = arith.mulf %83, %85 : vector<8x256xf32>
    %87 = arith.truncf %86 : vector<8x256xf32> to vector<8x256xbf16>
    %cst_40 = arith.constant dense<0.000000e+00> : vector<8x32xf32>
    %88 = tpu.matmul %87, %11, %cst_40 {dimension_numbers = #tpu.dot_dimension_numbers<[1], [0], [0], [1], [0, 0, 1, 1], [], []>} : vector<8x256xbf16>, vector<256x32xbf16>, vector<8x32xf32> -> vector<8x32xf32>
    %cst_41 = arith.constant dense<0.000000e+00> : vector<8x32xf32>
    %89 = tpu.matmul %84, %12, %cst_41 {dimension_numbers = #tpu.dot_dimension_numbers<[1], [0], [0], [1], [0, 0, 1, 1], [], []>} : vector<8x8xbf16>, vector<8x32xbf16>, vector<8x32xf32> -> vector<8x32xf32>
    %90 = arith.addf %88, %89 : vector<8x32xf32>
    %91 = arith.truncf %90 : vector<8x32xf32> to vector<8x32xbf16>
    %92 = vector.extract_strided_slice %13 {offsets = [0, 0], sizes = [32, 64], strides = [1, 1]} : vector<64x64xbf16> to vector<32x64xbf16>
    %cst_42 = arith.constant dense<0.000000e+00> : vector<8x64xf32>
    %93 = tpu.matmul %91, %92, %cst_42 {dimension_numbers = #tpu.dot_dimension_numbers<[1], [0], [0], [1], [0, 0, 1, 1], [], []>} : vector<8x32xbf16>, vector<32x64xbf16>, vector<8x64xf32> -> vector<8x64xf32>
    %94 = arith.addf %15, %93 : vector<8x64xf32>
    %95 = vector.extract_strided_slice %5 {offsets = [0, 32], sizes = [8, 32], strides = [1, 1]} : vector<8x64xf32> to vector<8x32xf32>
    %96 = arith.truncf %95 : vector<8x32xf32> to vector<8x32xbf16>
    %cst_43 = arith.constant dense<0.000000e+00> : vector<8x8xf32>
    %97 = tpu.matmul %96, %6, %cst_43 {dimension_numbers = #tpu.dot_dimension_numbers<[1], [0], [0], [1], [0, 0, 1, 1], [], []>} : vector<8x32xbf16>, vector<32x8xbf16>, vector<8x8xf32> -> vector<8x8xf32>
    %98 = vector.broadcast %7 : vector<1x8xf32> to vector<8x8xf32>
    %99 = arith.addf %97, %98 : vector<8x8xf32>
    %false_44 = arith.constant false
    %100 = vector.broadcast %false_44 : i1 to vector<8x8xi1>
    %cst_45 = arith.constant dense<0xFF800000> : vector<8xf32>
    %101 = vector.multi_reduction <maximumf>, %99, %cst_45 [1] : vector<8x8xf32> to vector<8xf32>
    %102 = vector.shape_cast %101 : vector<8xf32> to vector<8x1xf32>
    %103 = vector.broadcast %102 : vector<8x1xf32> to vector<8x8xf32>
    %104 = arith.cmpf oeq, %99, %103 : vector<8x8xf32>
    %c8_i32_46 = arith.constant 8 : i32
    %105 = vector.broadcast %c8_i32_46 : i32 to vector<8x8xi32>
    %106 = arith.select %104, %14, %105 : vector<8x8xi1>, vector<8x8xi32>
    %cst_47 = arith.constant dense<2147483647> : vector<8xi32>
    %107 = vector.multi_reduction <minsi>, %106, %cst_47 [1] : vector<8x8xi32> to vector<8xi32>
    %108 = vector.shape_cast %107 : vector<8xi32> to vector<8x1xi32>
    %109 = vector.broadcast %108 : vector<8x1xi32> to vector<8x8xi32>
    %110 = arith.cmpi eq, %14, %109 : vector<8x8xi32>
    %111 = arith.ori %100, %110 : vector<8x8xi1>
    %cst_48 = arith.constant 0xFF800000 : f32
    %112 = vector.broadcast %cst_48 : f32 to vector<8x8xf32>
    %113 = arith.select %110, %112, %99 : vector<8x8xi1>, vector<8x8xf32>
    %cst_49 = arith.constant dense<0xFF800000> : vector<8xf32>
    %114 = vector.multi_reduction <maximumf>, %113, %cst_49 [1] : vector<8x8xf32> to vector<8xf32>
    %115 = vector.shape_cast %114 : vector<8xf32> to vector<8x1xf32>
    %116 = vector.broadcast %115 : vector<8x1xf32> to vector<8x8xf32>
    %117 = arith.cmpf oeq, %113, %116 : vector<8x8xf32>
    %c8_i32_50 = arith.constant 8 : i32
    %118 = vector.broadcast %c8_i32_50 : i32 to vector<8x8xi32>
    %119 = arith.select %117, %14, %118 : vector<8x8xi1>, vector<8x8xi32>
    %cst_51 = arith.constant dense<2147483647> : vector<8xi32>
    %120 = vector.multi_reduction <minsi>, %119, %cst_51 [1] : vector<8x8xi32> to vector<8xi32>
    %121 = vector.shape_cast %120 : vector<8xi32> to vector<8x1xi32>
    %122 = vector.broadcast %121 : vector<8x1xi32> to vector<8x8xi32>
    %123 = arith.cmpi eq, %14, %122 : vector<8x8xi32>
    %124 = arith.ori %111, %123 : vector<8x8xi1>
    %cst_52 = arith.constant 0xFF800000 : f32
    %125 = vector.broadcast %cst_52 : f32 to vector<8x8xf32>
    %126 = arith.select %124, %99, %125 : vector<8x8xi1>, vector<8x8xf32>
    %cst_53 = arith.constant dense<0xFF800000> : vector<8xf32>
    %127 = vector.multi_reduction <maximumf>, %126, %cst_53 [1] : vector<8x8xf32> to vector<8xf32>
    %128 = vector.shape_cast %127 : vector<8xf32> to vector<8x1xf32>
    %129 = vector.broadcast %128 : vector<8x1xf32> to vector<8x8xf32>
    %130 = arith.subf %126, %129 : vector<8x8xf32>
    %131 = math.exp %130 : vector<8x8xf32>
    %cst_54 = arith.constant 0.000000e+00 : f32
    %132 = vector.broadcast %cst_54 : f32 to vector<8x8xf32>
    %133 = arith.select %124, %131, %132 : vector<8x8xi1>, vector<8x8xf32>
    %cst_55 = arith.constant dense<0.000000e+00> : vector<8xf32>
    %134 = vector.multi_reduction <add>, %133, %cst_55 [1] : vector<8x8xf32> to vector<8xf32>
    %135 = vector.shape_cast %134 : vector<8xf32> to vector<8x1xf32>
    %136 = tpu.reciprocal %135 {approx = true} : vector<8x1xf32> -> vector<8x1xf32>
    %137 = vector.broadcast %136 : vector<8x1xf32> to vector<8x8xf32>
    %138 = arith.mulf %133, %137 : vector<8x8xf32>
    %139 = math.log %135 : vector<8x1xf32>
    %140 = arith.addf %128, %139 : vector<8x1xf32>
    %141 = arith.mulf %140, %140 : vector<8x1xf32>
    %142 = arith.addf %64, %141 : vector<8x1xf32>
    %cst_56 = arith.constant dense<0.000000e+00> : vector<8x512xf32>
    %143 = tpu.matmul %96, %8, %cst_56 {dimension_numbers = #tpu.dot_dimension_numbers<[1], [0], [0], [1], [0, 0, 1, 1], [], []>} : vector<8x32xbf16>, vector<32x512xbf16>, vector<8x512xf32> -> vector<8x512xf32>
    %144 = vector.extract_strided_slice %143 {offsets = [0, 0], sizes = [8, 256], strides = [1, 1]} : vector<8x512xf32> to vector<8x256xf32>
    %145 = arith.mulf %144, %144 : vector<8x256xf32>
    %146 = arith.mulf %144, %145 : vector<8x256xf32>
    %cst_57 = arith.constant 4.471500e-02 : f32
    %147 = vector.broadcast %cst_57 : f32 to vector<8x256xf32>
    %148 = arith.mulf %147, %146 : vector<8x256xf32>
    %149 = arith.addf %144, %148 : vector<8x256xf32>
    %cst_58 = arith.constant 0.797884583 : f32
    %150 = vector.broadcast %cst_58 : f32 to vector<8x256xf32>
    %151 = arith.mulf %150, %149 : vector<8x256xf32>
    %152 = math.tanh %151 : vector<8x256xf32>
    %cst_59 = arith.constant 1.000000e+00 : f32
    %153 = vector.broadcast %cst_59 : f32 to vector<8x256xf32>
    %154 = arith.addf %153, %152 : vector<8x256xf32>
    %cst_60 = arith.constant 5.000000e-01 : f32
    %155 = vector.broadcast %cst_60 : f32 to vector<8x256xf32>
    %156 = arith.mulf %155, %154 : vector<8x256xf32>
    %157 = arith.mulf %144, %156 : vector<8x256xf32>
    %158 = vector.extract_strided_slice %143 {offsets = [0, 256], sizes = [8, 256], strides = [1, 1]} : vector<8x512xf32> to vector<8x256xf32>
    %159 = arith.mulf %157, %158 : vector<8x256xf32>
    %160 = vector.broadcast %9 : vector<1x256xf32> to vector<8x256xf32>
    %161 = arith.mulf %159, %160 : vector<8x256xf32>
    %162 = arith.truncf %138 : vector<8x8xf32> to vector<8x8xbf16>
    %cst_61 = arith.constant dense<0.000000e+00> : vector<8x256xf32>
    %163 = tpu.matmul %162, %10, %cst_61 {dimension_numbers = #tpu.dot_dimension_numbers<[1], [0], [0], [1], [0, 0, 1, 1], [], []>} : vector<8x8xbf16>, vector<8x256xbf16>, vector<8x256xf32> -> vector<8x256xf32>
    %164 = arith.mulf %161, %163 : vector<8x256xf32>
    %165 = arith.truncf %164 : vector<8x256xf32> to vector<8x256xbf16>
    %cst_62 = arith.constant dense<0.000000e+00> : vector<8x32xf32>
    %166 = tpu.matmul %165, %11, %cst_62 {dimension_numbers = #tpu.dot_dimension_numbers<[1], [0], [0], [1], [0, 0, 1, 1], [], []>} : vector<8x256xbf16>, vector<256x32xbf16>, vector<8x32xf32> -> vector<8x32xf32>
    %cst_63 = arith.constant dense<0.000000e+00> : vector<8x32xf32>
    %167 = tpu.matmul %162, %12, %cst_63 {dimension_numbers = #tpu.dot_dimension_numbers<[1], [0], [0], [1], [0, 0, 1, 1], [], []>} : vector<8x8xbf16>, vector<8x32xbf16>, vector<8x32xf32> -> vector<8x32xf32>
    %168 = arith.addf %166, %167 : vector<8x32xf32>
    %169 = arith.truncf %168 : vector<8x32xf32> to vector<8x32xbf16>
    %170 = vector.extract_strided_slice %13 {offsets = [32, 0], sizes = [32, 64], strides = [1, 1]} : vector<64x64xbf16> to vector<32x64xbf16>
    %cst_64 = arith.constant dense<0.000000e+00> : vector<8x64xf32>
    %171 = tpu.matmul %169, %170, %cst_64 {dimension_numbers = #tpu.dot_dimension_numbers<[1], [0], [0], [1], [0, 0, 1, 1], [], []>} : vector<8x32xbf16>, vector<32x64xbf16>, vector<8x64xf32> -> vector<8x64xf32>
    %172 = arith.addf %94, %171 : vector<8x64xf32>
    %c0_65 = arith.constant 0 : index
    %c0_66 = arith.constant 0 : index
    %173 = vector.load %arg12[%c0_65, %c0_66] : memref<1x64xf32, #tpu.memory_space<vmem>>, vector<1x64xf32>
    %174 = vector.broadcast %173 : vector<1x64xf32> to vector<8x64xf32>
    %175 = arith.addf %172, %174 : vector<8x64xf32>
    %c0_67 = arith.constant 0 : index
    %c0_68 = arith.constant 0 : index
    %176 = vector.load %arg13[%c0_67, %c0_68] : memref<8x64xf32, #tpu.memory_space<vmem>>, vector<8x64xf32>
    tpu.vector_store %arg13[%c0_67, %c0_68], %175 {strides = array<i32>} : memref<8x64xf32, #tpu.memory_space<vmem>>, vector<8x64xf32>,
    %c0_69 = arith.constant 0 : index
    %c0_70 = arith.constant 0 : index
    %177 = vector.load %arg14[%c0_69, %c0_70] : memref<8x1xf32, #tpu.memory_space<vmem>>, vector<8x1xf32>
    tpu.vector_store %arg14[%c0_69, %c0_70], %142 {strides = array<i32>} : memref<8x1xf32, #tpu.memory_space<vmem>>, vector<8x1xf32>,
    return
  }
  func.func @transform_0(%arg0: i32) -> (i32, i32) {
    %c0_i32 = arith.constant 0 : i32
    %c0_i32_0 = arith.constant 0 : i32
    return %arg0, %c0_i32 : i32, i32
  }
  func.func @transform_1(%arg0: i32) -> (i32, i32) {
    %c0_i32 = arith.constant 0 : i32
    %c0_i32_0 = arith.constant 0 : i32
    %c0_i32_1 = arith.constant 0 : i32
    return %c0_i32, %c0_i32_0 : i32, i32
  }
  func.func @transform_2(%arg0: i32) -> (i32, i32) {
    %c0_i32 = arith.constant 0 : i32
    %c0_i32_0 = arith.constant 0 : i32
    %c0_i32_1 = arith.constant 0 : i32
    return %c0_i32, %c0_i32_0 : i32, i32
  }
  func.func @transform_3(%arg0: i32) -> (i32, i32) {
    %c0_i32 = arith.constant 0 : i32
    %c0_i32_0 = arith.constant 0 : i32
    %c0_i32_1 = arith.constant 0 : i32
    return %c0_i32, %c0_i32_0 : i32, i32
  }
  func.func @transform_4(%arg0: i32) -> (i32, i32) {
    %c0_i32 = arith.constant 0 : i32
    %c0_i32_0 = arith.constant 0 : i32
    %c0_i32_1 = arith.constant 0 : i32
    return %c0_i32, %c0_i32_0 : i32, i32
  }
  func.func @transform_5(%arg0: i32) -> (i32, i32) {
    %c0_i32 = arith.constant 0 : i32
    %c0_i32_0 = arith.constant 0 : i32
    %c0_i32_1 = arith.constant 0 : i32
    return %c0_i32, %c0_i32_0 : i32, i32
  }
  func.func @transform_6(%arg0: i32) -> (i32, i32) {
    %c0_i32 = arith.constant 0 : i32
    %c0_i32_0 = arith.constant 0 : i32
    %c0_i32_1 = arith.constant 0 : i32
    return %c0_i32, %c0_i32_0 : i32, i32
  }
  func.func @transform_7(%arg0: i32) -> (i32, i32) {
    %c0_i32 = arith.constant 0 : i32
    %c0_i32_0 = arith.constant 0 : i32
    %c0_i32_1 = arith.constant 0 : i32
    return %c0_i32, %c0_i32_0 : i32, i32
  }
  func.func @transform_8(%arg0: i32) -> (i32, i32) {
    %c0_i32 = arith.constant 0 : i32
    %c0_i32_0 = arith.constant 0 : i32
    %c0_i32_1 = arith.constant 0 : i32
    return %c0_i32, %c0_i32_0 : i32, i32
  }
  func.func @transform_9(%arg0: i32) -> (i32, i32) {
    %c0_i32 = arith.constant 0 : i32
    %c0_i32_0 = arith.constant 0 : i32
    %c0_i32_1 = arith.constant 0 : i32
    return %c0_i32, %c0_i32_0 : i32, i32
  }
  func.func @transform_10(%arg0: i32) -> (i32, i32) {
    %c0_i32 = arith.constant 0 : i32
    %c0_i32_0 = arith.constant 0 : i32
    %c0_i32_1 = arith.constant 0 : i32
    return %c0_i32, %c0_i32_0 : i32, i32
  }
  func.func @transform_11(%arg0: i32) -> (i32, i32) {
    %c0_i32 = arith.constant 0 : i32
    %c0_i32_0 = arith.constant 0 : i32
    %c0_i32_1 = arith.constant 0 : i32
    return %c0_i32, %c0_i32_0 : i32, i32
  }
  func.func @transform_12(%arg0: i32) -> (i32, i32) {
    %c0_i32 = arith.constant 0 : i32
    %c0_i32_0 = arith.constant 0 : i32
    return %arg0, %c0_i32 : i32, i32
  }
  func.func @transform_13(%arg0: i32) -> (i32, i32) {
    %c0_i32 = arith.constant 0 : i32
    %c0_i32_0 = arith.constant 0 : i32
    return %arg0, %c0_i32 : i32, i32
  }
}

</mosaic_0001>

<bundles_post_ra>
// kernel: sparse_moe_forward.1
= control target key start
LH: loop header
LB: loop body
LE: loop exit
PB: predicated region body
PF: predicated region fallthrough
CT: control target
= control target key end

     0   :  { %s2579_s0 = inlined_call_operand.vmem [shape: bf16[16,64], index: 0, kind: input, shape index: {}]   ;;  %s2580_s1 = inlined_call_operand.vmem [shape: bf16[64,64], index: 1, kind: input, shape index: {}]   ;;  %s2581_s2 = inlined_call_operand.vmem [shape: f32[1,64], index: 2, kind: input, shape index: {}]   ;;  %s2582_s3 = inlined_call_operand.vmem [shape: bf16[32,8], index: 3, kind: input, shape index: {}]   ;;  %s2583_s4 = inlined_call_operand.vmem [shape: f32[1,8], index: 4, kind: input, shape index: {}]   ;;  %s2584_s5 = inlined_call_operand.vmem [shape: bf16[32,512], index: 5, kind: input, shape index: {}]   ;;  %s2585_s6 = inlined_call_operand.vmem [shape: f32[1,256], index: 6, kind: input, shape index: {}]   ;;  %s2586_s7 = inlined_call_operand.vmem [shape: bf16[8,256], index: 7, kind: input, shape index: {}]   ;;  %s2587_s8 = inlined_call_operand.vmem [shape: bf16[256,32], index: 8, kind: input, shape index: {}]   ;;  %s2588_s9 = inlined_call_operand.vmem [shape: bf16[8,32], index: 9, kind: input, shape index: {}]   ;;  %s2589_s10 = inlined_call_operand.vmem [shape: bf16[64,64], index: 10, kind: input, shape index: {}]   ;;  %s2590_s11 = inlined_call_operand.vmem [shape: f32[1,64], index: 11, kind: input, shape index: {}]   ;;  %s2591_s12 = inlined_call_operand.hbm [shape: f32[16,64], index: 12, kind: output, shape index: {0}]   ;;  %s2592_s13 = inlined_call_operand.vmem [shape: f32[16,1], index: 13, kind: output, shape index: {1}]  }
   0x1   :  { %2593 = sst [smem:[#allocation6_spill]] %s2579_s0 }
   0x2   :  { %2594 = sst [smem:[#allocation7_spill]] %s2580_s1 }
   0x3   :  { %19 = vsyncpa [#allocation3], 0 }
   0x4   :  { %21 = vsyncpa [#allocation3 + $0x1], 0  ;;  %s2107_s25 = smov 0   ;;  %s2109_s26 = smov 0  }
   0x5   :  { %s2111_s27 = smov 0   ;;  %s2113_s28 = smov 0  }
   0x6 LB: > { %s2128_s29 = sadd.s32 4294967295, %s2030_s28   ;;  %s1679_s30 = sadd.s32 4294967294, %s2030_s28   ;;  %s2030_s28 = sphi %s2113_s28, %s2604_s28   ;;  %s2026_s27 = sphi %s2111_s27, %s2603_s27   ;;  %s2022_s26 = sphi %s2109_s26, %s2602_s26   ;;  %s2018_s25 = sphi %s2107_s25, %s2601_s25  }
   0x7   : > { %s2132_s14 = sadd.s32 1, %s2030_s28   ;;  %s291_s15 = sadd.s32 1, %s2026_s27 }
   0x8   : > { %s288_s16 = ssub.s32 %s2030_s28, %s2132_s14  ;;  %p301_p0 = scmp.ne.s32.totalorder %s2026_s27, %s2022_s26 }
   0x9   : > { %p289_p1 = scmp.eq.s32.totalorder %s288_s16, 0  ;;  %p302_p2 = scmp.eq.s32.totalorder %s2128_s29, 1 }
   0xa   : > { %p307_p3 = scmp.ne.s32.totalorder %s2022_s26, %s2018_s25  ;;  %p308_p4 = scmp.eq.s32.totalorder %s1679_s30, 1 }
   0xb   : > { %s2143_s17 = scalar_select %p289_p1, %s2026_s27, %s291_s15  }
   0xc   : > { %p2145_p5 = por %p302_p2, %p301_p0  ;;  %p2149_p6 = por %p308_p4, %p307_p3 }
   0xd   : > { %2595 = sst [smem:[#allocation5_spill]] %s2143_s17  ;;  %p1682_p7 = scmp.ge.s32.totalorder %s2030_s28, 1 }
   0xe   : > { %p392_p8 = scmp.lt.s32.totalorder %s2030_s28, 3 }
  0x10   : > { %p393_p9 = pnand %p1682_p7, %p392_p8 }
  0x11   : > { %s2598_s1 = sld [smem:[#allocation7_spill]] (!%p393_p9)  ;;  %v2032_v1 = vmov (!%p393_p9), 0.0   ;;  %vm2033_vm0 = vmmov (!%p393_p9), 0   ;;  %p439_p10 = scmp.lt.s32.totalorder (!%p393_p9), %s2128_s29, 1  ;;  %v2175_v3 = vld [vmem:[%s2582_s3] sm:$0xff] (!%p393_p9)   ;;  %vm488_vm1 = vcmask (!%p393_p9), 523264   ;;  %v588_v59 = vlaneseq (!%p393_p9) }
  0x12   : > { %396 = sbr.rel (%p393_p9) target bundleno = 3770 (0xeba), region = 68  ;;  %1809 = vmatprep.subr.bf16.mxu0 (!%p393_p9), %v2032_v1  ;;  %1821 = vmatprep.subr.bf16.mxu1 (!%p393_p9), %v2032_v1  ;;  %s2599_s0 = sld [smem:[#allocation6_spill]] (!%p393_p9)  ;;  %v2198_v7 = vld [vmem:[%s2582_s3 + $0x8] sm:$0xff] (!%p393_p9)   ;;  %v2204_v8 = vld [vmem:[%s2584_s5 + $0x4] ss:$16 sps:$4 sm:$0xff] (!%p393_p9)   ;;  %vm609_vm2 = vcmask (!%p393_p9), 261120  }
  0x13   : > { %1817 = vmatprep.mubr.msk.bf16.mxu0 (!%p393_p9), %vm2033_vm0, %v2032_v1  ;;  %1825 = vmatprep.mubr.msk.bf16.mxu1 (!%p393_p9), %vm2033_vm0, %v2032_v1  ;;  %v1686_v9 = vld [vmem:[%s2581_s2] ss:$0 sm:$0xff] (!%p393_p9)  ;;  %v2220_v17 = vld [vmem:[%s2584_s5 + $0x24] ss:$16 sps:$4 sm:$0xff] (!%p393_p9)   ;;  %v2034_v19 = vmov (!%p393_p9), 0   ;;  %vm653_vm3 = vcmask (!%p393_p9), 64512  }
  0x14   : > { %1822 = vmatpush3.bf16.msra.mxu1 (!%p393_p9), %v2175_v3  ;;  %v2213_v14 = vld [vmem:[%s2584_s5] ss:$16 sps:$4 sm:$0xff] (!%p393_p9)   ;;  %v2235_v20 = vld [vmem:[%s2584_s5 + $0xc] ss:$16 sps:$4 sm:$0xff] (!%p393_p9)   ;;  %v2241_v21 = vld [vmem:[%s2584_s5 + $0x8] ss:$16 sps:$4 sm:$0xff] (!%p393_p9)  }
  0x15   : > { %1823 = vmatprep.subr.bf16.mxu1 (!%p393_p9), %v2032_v1  ;;  %v2228_v18 = vld [vmem:[%s2584_s5 + $0x20] ss:$16 sps:$4 sm:$0xff] (!%p393_p9)   ;;  %v2247_v22 = vld [vmem:[%s2584_s5 + $0x2c] ss:$16 sps:$4 sm:$0xff] (!%p393_p9)   ;;  %v2255_v23 = vld [vmem:[%s2584_s5 + $0x28] ss:$16 sps:$4 sm:$0xff] (!%p393_p9)  }
  0x16   : > { %v2266_v24 = vld [vmem:[%s2583_s4] ss:$0 sm:$0xff] (!%p393_p9)  ;;  %v2278_v60 = vand.u32 (!%p393_p9), 127, %v588_v59  ;;  %s2035_s30 = smov (!%p393_p9), 96   ;;  %vm880_vm11 = vcmask (!%p393_p9), 1043456   ;;  %s1741_s22 = sshll.u32 (!%p393_p9), %s2128_s29, 7 }
  0x17   : > { %v1908_v0 = vld [vmem:[%s2598_s1] sm:$0xff] (!%p393_p9)   ;;  %v1909_v2 = vld [vmem:[%s2598_s1 + $0x8] sm:$0xff] (!%p393_p9)   ;;  %v1910_v4 = vld [vmem:[%s2598_s1 + $0x10] sm:$0xff] (!%p393_p9)   ;;  %s2036_s20 = smov (!%p393_p9), [#allocation2]  }
  0x18   : > { %1810 = vmatpush3.bf16.msra.mxu0 (!%p393_p9), %v1908_v0  ;;  %v1911_v5 = vld [vmem:[%s2598_s1 + $0x18] sm:$0xff] (!%p393_p9)   ;;  %1824 = vmatpush3.bf16.msra.mxu1 (!%p393_p9), %v2198_v7 }
  0x19   : > { %1811 = vmatprep.subr.bf16.mxu0 %v2032_v1  ;;  %s2170_s24 = scalar_select %p439_p10, %s2128_s29, 1  ;;  %756 = vmatprep.subr.bf16.mxu1 %v2204_v8 }
  0x1b   : > { %s1684_s21 = sshll.u32 %s2170_s24, 2  ;;  %s1685_s23 = sshll.u32 %s2170_s24, 3 }
  0x1c   : > { %1812 = vmatpush3.bf16.msra.mxu0 %v1909_v2  ;;  %s442_s17 = scalar_lea.vmem %s2599_s0, %s1684_s21  ;;  %s446_s16 = scalar_lea.vmem %s2592_s13, %s1685_s23 }
  0x1d   : > { %1813 = vmatprep.subr.bf16.mxu0 %v2032_v1  ;;  %v448_v6 = vld [vmem:[%s442_s17] sm:$0xf]  ;;  %s2536_s0 = scalar_lea.hbm %s2591_s12, %s1741_s22  ;;  %s1972_s21 = sshll.u32 %s2036_s20, 4  ;;  %s1973_s21 = int_to_ptr.vmem [resolvable:$false] %s1972_s21 }
  0x1e   : > { %s1974_s1 = scalar_lea.vmem %s1973_s21, 256 }
  0x20   : > { %1814 = vmatpush3.bf16.msra.mxu0 %v1910_v4 }
  0x21   : > { %1815 = vmatprep.subr.bf16.mxu0 %v2032_v1 }
  0x24   : > { %1816 = vmatpush3.bf16.msra.mxu0 %v1911_v5 }
  0x25   : > { %1829 = vmatprep.subr.bf16.mxu0 %v2032_v1 }
  0x27   : > { %1818 = vmatmul.mubr.msk.bf16.vlgmr.msra.gmra.mrb[0].mxu0 %vm488_vm1, %v448_v6 }
  0x28   : > { %1831 = vmatprep.mubr.msk.bf16.mxu0 %vm2033_vm0, %v2032_v1 }
  0xfa   : > { %v526_v10 = vpop.f32.mrb[0].mxu0 }
  0xfb   : > { %v527_v11 = vadd.f32 %v1686_v9, %v526_v10  ;;  %v1819_v12 = vpop.f32.mrb[1].mxu0 }
  0xfc   : > { %v529_v13 = vpop.f32.mrb[2].mxu0 }
  0xfd   : > { %v2215_v15 = vpack.c.bf16 %v527_v11, %v527_v11  ;;  %v1820_v16 = vpop.f32.mrb[3].mxu0 }
  0xff   : > { %1826 = vmatmul.mubr.msk.bf16.vlgmr.msra.gmra.mrb[0].mxu1 %vm609_vm2, %v2215_v15 }
 0x100   : > { %757 = vmatpush1.bf16.msra.mxu1 %v2213_v14  ;;  %788 = vmatprep.mubr.bf16.mxu1 %v2034_v19 }
 0x101   : > { %758 = vmatprep.subr.bf16.mxu1 %v2220_v17 }
 0x104   : > { %759 = vmatpush1.bf16.msra.mxu1 %v2228_v18 }
 0x105   : > { %797 = vmatprep.subr.bf16.mxu1 %v2235_v20 }
 0x107   : > { %1704 = vmatmul.mubr.msk.bf16.vlgmr.msra.gmra.mrb[4].mxu1 %vm609_vm2, %v2215_v15 }
 0x108   : > { %798 = vmatpush1.bf16.msra.mxu1 %v2241_v21  ;;  %829 = vmatprep.mubr.bf16.mxu1 %v2034_v19 }
 0x109   : > { %799 = vmatprep.subr.bf16.mxu1 %v2247_v22 }
 0x10c   : > { %800 = vmatpush1.bf16.msra.mxu1 %v2255_v23 }
 0x10f   : > { %1705 = vmatmul.mubr.msk.bf16.vlgmr.msra.gmra.mrb[8].mxu1 %vm609_vm2, %v2215_v15 }
 0x110   : > { %919 = vmatprep.mubr.bf16.mxu1 %v2034_v19 }
 0x1d2   : > { %v647_v25 = vpop.f32.mrb[0].mxu1 }
 0x1d3   : > { %v2269_v26 = vadd.f32 %v2266_v24, %v647_v25  ;;  %v1827_v27 = vpop.f32.mrb[1].mxu1 }
 0x1d4   : > { %v650_v28 = vpop.f32.mrb[2].mxu1 }
 0x1d5   : > { %v1828_v29 = vpop.f32.mrb[3].mxu1  ;;  %v654_v30 = vsel %vm653_vm3, %v2269_v26, -inf }
 0x1d6   : > { %655 = vmax.xlane.f32.xlu0 %v654_v30 }
 0x1da   : > { %v790_v31 = vpop.f32.mrb[4].mxu1 }
 0x1db   : > { %v838_v32 = vmul.f32 %v790_v31, %v790_v31  ;;  %v792_v33 = vpop.f32.mrb[5].mxu1 }
 0x1dc   : > { %v839_v34 = vmul.f32 %v792_v33, %v792_v33  ;;  %v794_v35 = vpop.f32.mrb[6].mxu1 }
 0x1dd   : > { %v840_v36 = vmul.f32 %v838_v32, %v790_v31  ;;  %v795_v37 = vpop.f32.mrb[7].mxu1 }
 0x1de   : > { %v841_v38 = vmul.f32 %v839_v34, %v792_v33 }
 0x1df   : > { %v842_v39 = vmul.f32 0.044715, %v840_v36 }
 0x1e0   : > { %v843_v40 = vmul.f32 0.044715, %v841_v38 }
 0x1e1   : > { %v844_v41 = vadd.f32 %v842_v39, %v790_v31 }
 0x1e2   : > { %v845_v42 = vadd.f32 %v843_v40, %v792_v33  ;;  %v831_v43 = vpop.f32.mrb[8].mxu1 }
 0x1e3   : > { %v846_v44 = vmul.f32 0.7978846, %v844_v41  ;;  %v833_v45 = vpop.f32.mrb[9].mxu1 }
 0x1e4   : > { %v847_v46 = vmul.f32 0.7978846, %v845_v42  ;;  %v835_v47 = vpop.f32.mrb[10].mxu1 }
 0x1e5   : > { %1948 = vtanh.f32 %v846_v44  ;;  %v836_v48 = vpop.f32.mrb[11].mxu1 }
 0x1e6   : > { %1950 = vtanh.f32 %v847_v46 }
 0x1ef   : > { %v1949_v49 = vpop.eup %1948 }
 0x1f0   : > { %v1951_v50 = vpop.eup %1950  ;;  %v850_v51 = vadd.f32 1.0, %v1949_v49 }
 0x1f1   : > { %v851_v52 = vadd.f32 1.0, %v1951_v50 }
 0x1f2   : > { %v852_v53 = vmul.f32 0.5, %v850_v51 }
 0x1f3   : > { %v853_v54 = vmul.f32 0.5, %v851_v52 }
 0x1f4   : > { %v854_v55 = vmul.f32 %v852_v53, %v790_v31 }
 0x1f5   : > { %v855_v56 = vmul.f32 %v853_v54, %v792_v33  ;;  %v1928_v54 = vld [vmem:[%s2587_s8 + $0x40] sm:$0xff]  }
 0x1f6   : > { %v2273_v57 = vmul.f32 %v854_v55, %v831_v43 }
 0x1f7   : > { %v2275_v58 = vmul.f32 %v855_v56, %v833_v45 }
 0x263   : > { %v656_v61 = vpop.xlane.xlu0 %655 }
 0x264   : > { %vm657_vm4 = vcmp.eq.f32.partialorder %v2269_v26, %v656_v61 }
 0x265   : > { %v658_v62 = vsel %vm657_vm4, %v2278_v60, 8 }
 0x266   : > { %v659_v63 = vsel %vm653_vm3, %v658_v62, 2147483647 }
 0x267   : > { %v661_v0 = vshra.s32 %v659_v63, 16  ;;  %v660_v4 = vand.u32 65535, %v659_v63  ;;  %v2322_v63 = vld [vmem:[%s2587_s8] sm:$0xff]  }
 0x269   : > { %v663_v2 = vcvt.s32.f32 %v661_v0  ;;  %v662_v6 = vcvt.s32.f32 %v660_v4  ;;  %v2327_v0 = vld [vmem:[%s2587_s8 + $0x48] sm:$0xff]   ;;  %v2345_v4 = vld [vmem:[%s2587_s8 + $0x50] sm:$0xff]  }
 0x26b   : > { %664 = vmin.xlane.f32.xlu0 %v663_v2 }
 0x2f8   : > { %v665_v5 = vpop.xlane.xlu0 %664 }
 0x2f9   : > { %vm666_vm5 = vcmp.eq.f32.partialorder %v663_v2, %v665_v5  ;;  %v671_v10 = vcvt.f32.s32 %v665_v5  ;;  %v2339_v2 = vld [vmem:[%s2587_s8 + $0x8] sm:$0xff]  }
 0x2fa   : > { %v667_v9 = vsel %vm666_vm5, %v662_v6, inf  ;;  %v2359_v6 = vld [vmem:[%s2587_s8 + $0x58] sm:$0xff]  }
 0x2fb   : > { %668 = vmin.xlane.f32.xlu1 %v667_v9  ;;  %v672_v12 = vshll.u32 %v671_v10, 16  ;;  %v545_v10 = vld [vmem:[%s2585_s6] sm:$0x3] }
 0x388   : > { %v669_v11 = vpop.xlane.xlu1 %668 }
 0x389   : > { %v670_v13 = vcvt.f32.s32 %v669_v11 }
 0x38b   : > { %v673_v16 = vadd.s32 %v672_v12, %v670_v13 }
 0x38d   : > { %vm674_vm6 = vcmp.eq.s32.totalorder %v2278_v60, %v673_v16 }
 0x38e   : > { %v675_v25 = vsel %vm674_vm6, -inf, %v2269_v26 }
 0x38f   : > { %v676_v27 = vsel %vm653_vm3, %v675_v25, -inf }
 0x390   : > { %677 = vmax.xlane.f32.xlu1 %v676_v27 }
 0x41d   : > { %v678_v28 = vpop.xlane.xlu1 %677 }
 0x41e   : > { %vm679_vm7 = vcmp.eq.f32.partialorder %v675_v25, %v678_v28 }
 0x41f   : > { %v680_v29 = vsel %vm679_vm7, %v2278_v60, 8  ;;  %vm1573_vm7 = vcmask 7168  }
 0x420   : > { %v681_v30 = vsel %vm653_vm3, %v680_v29, 2147483647 }
 0x421   : > { %v683_v31 = vshra.s32 %v681_v30, 16  ;;  %v682_v33 = vand.u32 65535, %v681_v30 }
 0x423   : > { %v685_v32 = vcvt.s32.f32 %v683_v31  ;;  %v684_v35 = vcvt.s32.f32 %v682_v33 }
 0x425   : > { %686 = vmin.xlane.f32.xlu0 %v685_v32 }
 0x4b2   : > { %v687_v34 = vpop.xlane.xlu0 %686 }
 0x4b3   : > { %vm688_vm8 = vcmp.eq.f32.partialorder %v685_v32, %v687_v34  ;;  %v693_v37 = vcvt.f32.s32 %v687_v34 }
 0x4b4   : > { %v689_v36 = vsel %vm688_vm8, %v684_v35, inf }
 0x4b5   : > { %690 = vmin.xlane.f32.xlu1 %v689_v36  ;;  %v694_v39 = vshll.u32 %v693_v37, 16 }
 0x542   : > { %v691_v38 = vpop.xlane.xlu1 %690 }
 0x543   : > { %v692_v40 = vcvt.f32.s32 %v691_v38 }
 0x545   : > { %v695_v41 = vadd.s32 %v694_v39, %v692_v40 }
 0x547   : > { %vm696_vm9 = vcmp.eq.s32.totalorder %v2278_v60, %v695_v41 }
 0x548   : > { %vm697_vm10 = vmor %vm674_vm6, %vm696_vm9 }
 0x549   : > { %v698_v42 = vsel %vm697_vm10, %v2269_v26, -inf  ;;  %v546_v26 = vld [vmem:[%s2586_s7] sm:$0xff] }
 0x54a   : > { %v699_v43 = vsel %vm653_vm3, %v698_v42, -inf  ;;  %v1707_v50 = vcombine.high %v546_v26, %v546_v26  ;;  %v1706_v51 = vcombine.low %v546_v26, %v546_v26 }
 0x54b   : > { %700 = vmax.xlane.f32.xlu0 %v699_v43 }
 0x54c   : > { %1708 = vmatprep.subr.msk.bf16.mxu1 %vm880_vm11, %v1707_v50  ;;  %v882_v53 = vsel %vm880_vm11, %v1706_v51, 0 }
 0x54d   : > { %888 = vmatpush1.bf16.msra.mxu1 %v882_v53 }
 0x54e   : > { %1754 = vmatprep.subr.bf16.mxu1 %v1928_v54 }
 0x561   : > { %1113 = vrot.lane.b32.xlu0 %v2215_v15, %s2035_s30  ;;  %v579_v15 = vld [vmem:[%s2588_s9] sm:$0xf] }
 0x562   : > { %v2307_v52 = vsel %vm880_vm11, %v579_v15, 0 }
 0x563   : > { %1830 = vmatpush3.bf16.msra.mxu0 %v2307_v52 }
 0x564   : > { %1835 = vmatprep.subr.bf16.mxu0 %v2032_v1 }
 0x5d8   : > { %v2296_v44 = vpop.xlane.xlu0 %700 }
 0x5d9   : > { %v702_v45 = vsub.f32 %v698_v42, %v2296_v44 }
 0x5db   : > { %v703_v46 = vmul.f32 1.442695, %v702_v45 }
 0x5dc   : > { %v1114_v5 = vpop.permute.xlu0 %1113 }
 0x5dd   : > { %1952 = vpow2.f32 %v703_v46 }
 0x5e7   : > { %v1953_v47 = vpop.eup %1952 }
 0x5e8   : > { %v705_v48 = vsel %vm697_vm10, %v1953_v47, 0.0 }
 0x5e9   : > { %v706_v49 = vsel %vm653_vm3, %v705_v48, 0.0 }
 0x5ea   : > { %707 = vadd.xlane.f32.xlu1 %v706_v49 }
 0x677   : > { %v2316_v55 = vpop.xlane.xlu1 %707 }
 0x678   : > { %1954 = vrcp.f32 %v2316_v55 }
 0x682   : > { %v1955_v56 = vpop.eup %1954 }
 0x683   : > { %v710_v61 = vmul.f32 %v1955_v56, %v705_v48 }
 0x685   : > { %v871_v62 = vpack.c.bf16 %v710_v61, %v710_v61 }
 0x687   : > { %1709 = vmatmul.mubr.msk.bf16.vlgmr.msra.gmra.mrb[12].mxu1 %vm653_vm3, %v871_v62  ;;  %1832 = vmatmul.mubr.msk.bf16.vlgmr.msra.gmra.mrb[4].mxu0 %vm653_vm3, %v871_v62 }
 0x688   : > { %1836 = vmatpush3.bf16.msra.mxu0 %v2175_v3  ;;  %1839 = vmatprep.mubr.msk.bf16.mxu0 %vm2033_vm0, %v2032_v1  ;;  %v2353_v3 = vld [vmem:[%s2587_s8 + $0x10] sm:$0xff]  }
 0x689   : > { %1837 = vmatprep.subr.bf16.mxu0 %v2032_v1  ;;  %1755 = vmatpush3.bf16.msra.mxu1 %v2322_v63 }
 0x68a   : > { %1756 = vmatprep.subr.bf16.mxu1 %v2327_v0 }
 0x68c   : > { %1838 = vmatpush3.bf16.msra.mxu0 %v2198_v7  ;;  %v2369_v7 = vld [vmem:[%s2587_s8 + $0x18] sm:$0xff]  }
 0x68d   : > { %1220 = vmatprep.subr.bf16.mxu0 %v2204_v8  ;;  %1757 = vmatpush3.bf16.msra.mxu1 %v2339_v2  ;;  %v2375_v8 = vld [vmem:[%s2587_s8 + $0x60] sm:$0xff]  }
 0x68e   : > { %1758 = vmatprep.subr.bf16.mxu1 %v2345_v4 }
 0x68f   : > { %1840 = vmatmul.mubr.msk.bf16.vlgmr.msra.gmra.mrb[8].mxu0 %vm609_vm2, %v1114_v5 }
 0x690   : > { %1221 = vmatpush1.bf16.msra.mxu0 %v2213_v14  ;;  %1252 = vmatprep.mubr.bf16.mxu0 %v2034_v19  ;;  %v2383_v14 = vld [vmem:[%s2587_s8 + $0x20] sm:$0xff]  }
 0x691   : > { %1222 = vmatprep.subr.bf16.mxu0 %v2220_v17  ;;  %1759 = vmatpush3.bf16.msra.mxu1 %v2353_v3  ;;  %v2389_v17 = vld [vmem:[%s2587_s8 + $0x68] sm:$0xff]  }
 0x692   : > { %1760 = vmatprep.subr.bf16.mxu1 %v2359_v6 }
 0x694   : > { %1223 = vmatpush1.bf16.msra.mxu0 %v2228_v18  ;;  %v2399_v18 = vld [vmem:[%s2587_s8 + $0x28] sm:$0xff]  }
 0x695   : > { %1261 = vmatprep.subr.bf16.mxu0 %v2235_v20  ;;  %1761 = vmatpush3.bf16.msra.mxu1 %v2369_v7  ;;  %v2405_v20 = vld [vmem:[%s2587_s8 + $0x70] sm:$0xff]  }
 0x696   : > { %1762 = vmatprep.subr.bf16.mxu1 %v2375_v8 }
 0x697   : > { %1728 = vmatmul.mubr.msk.bf16.vlgmr.msra.gmra.mrb[12].mxu0 %vm609_vm2, %v1114_v5 }
 0x698   : > { %1262 = vmatpush1.bf16.msra.mxu0 %v2241_v21  ;;  %1293 = vmatprep.mubr.bf16.mxu0 %v2034_v19  ;;  %v2416_v21 = vld [vmem:[%s2587_s8 + $0x30] sm:$0xff]  }
 0x699   : > { %1263 = vmatprep.subr.bf16.mxu0 %v2247_v22  ;;  %1763 = vmatpush3.bf16.msra.mxu1 %v2383_v14  ;;  %v2422_v22 = vld [vmem:[%s2587_s8 + $0x78] sm:$0xff]  }
 0x69a   : > { %1764 = vmatprep.subr.bf16.mxu1 %v2389_v17 }
 0x69c   : > { %1264 = vmatpush1.bf16.msra.mxu0 %v2255_v23  ;;  %v2427_v23 = vld [vmem:[%s2587_s8 + $0x38] sm:$0xff]  }
 0x69d   : > { %1765 = vmatpush3.bf16.msra.mxu1 %v2399_v18  ;;  %1730 = vmatprep.subr.msk.bf16.mxu0 %vm880_vm11, %v1707_v50 }
 0x69e   : > { %1766 = vmatprep.subr.bf16.mxu1 %v2405_v20 }
 0x69f   : > { %1729 = vmatmul.mubr.msk.bf16.vlgmr.msra.gmra.mrb[16].mxu0 %vm609_vm2, %v1114_v5 }
 0x6a0   : > { %1329 = vmatpush1.bf16.msra.mxu0 %v882_v53  ;;  %1360 = vmatprep.mubr.bf16.mxu0 %v2034_v19  ;;  %v860_v19 = vshrl.u32 %v588_v59, 7 }
 0x6a1   : > { %1781 = vmatprep.subr.bf16.mxu0 %v1928_v54  ;;  %1767 = vmatpush3.bf16.msra.mxu1 %v2416_v21 }
 0x6a2   : > { %1768 = vmatprep.subr.bf16.mxu1 %v2422_v22  ;;  %v861_v9 = vsub.s32 0, %v860_v19  ;;  %v865_v11 = vsub.s32 1, %v860_v19 }
 0x6a4   : > { %v2436_v12 = vrot.slane %v545_v10, %v861_v9  ;;  %v2438_v13 = vrot.slane %v545_v10, %v865_v11 }
 0x6a5   : > { %1769 = vmatpush3.bf16.msra.mxu1 %v2427_v23 }
 0x6a6   : > { %1843 = vmatprep.subr.bf16.mxu1 %v2032_v1  ;;  %v869_v16 = vmul.f32 %v2436_v12, %v2273_v57  ;;  %v870_v28 = vmul.f32 %v2438_v13, %v2275_v58 }
 0x75a   : > { %v921_v25 = vpop.f32.mrb[12].mxu1  ;;  %v2442_v27 = vpop.f32.mrb[4].mxu0 }
 0x75b   : > { %v928_v59 = vmul.f32 %v921_v25, %v869_v16  ;;  %v923_v29 = vpop.f32.mrb[13].mxu1  ;;  %v1833_v30 = vpop.f32.mrb[5].mxu0 }
 0x75c   : > { %v929_v31 = vmul.f32 %v923_v29, %v870_v28  ;;  %v925_v32 = vpop.f32.mrb[14].mxu1  ;;  %v972_v33 = vpop.f32.mrb[6].mxu0 }
 0x75d   : > { %v926_v34 = vpop.f32.mrb[15].mxu1  ;;  %v1834_v35 = vpop.f32.mrb[7].mxu0  ;;  %v930_v37 = vpack.c.bf16 %v928_v59, %v928_v59 }
 0x75e   : > { %v931_v36 = vpack.c.bf16 %v929_v31, %v929_v31 }
 0x760   : > { %1103 = vmatprep.mubr.bf16.mxu1 %v931_v36 }
 0x761   : > { %1104 = vmatmul.mubr.bf16.vlgmr.msra.gmra.mrb[16].mxu1 %v930_v37 }
 0x762   : > { %v1152_v38 = vpop.f32.mrb[8].mxu0  ;;  %1844 = vmatpush3.bf16.msra.mxu1 %v2307_v52  ;;  %1845 = vmatprep.mubr.msk.bf16.mxu1 %vm2033_vm0, %v2032_v1 }
 0x763   : > { %v2450_v57 = vadd.f32 %v2266_v24, %v1152_v38  ;;  %v1841_v58 = vpop.f32.mrb[9].mxu0  ;;  %1849 = vmatprep.subr.bf16.mxu1 %v2032_v1 }
 0x764   : > { %v1155_v39 = vpop.f32.mrb[10].mxu0 }
 0x765   : > { %v1842_v40 = vpop.f32.mrb[11].mxu0  ;;  %v1158_v41 = vsel %vm653_vm3, %v2450_v57, -inf }
 0x766   : > { %1159 = vmax.xlane.f32.xlu1 %v1158_v41 }
 0x76a   : > { %v1254_v42 = vpop.f32.mrb[12].mxu0 }
 0x76b   : > { %v1302_v43 = vmul.f32 %v1254_v42, %v1254_v42  ;;  %v1256_v45 = vpop.f32.mrb[13].mxu0 }
 0x76c   : > { %v1303_v46 = vmul.f32 %v1256_v45, %v1256_v45  ;;  %v1258_v47 = vpop.f32.mrb[14].mxu0 }
 0x76d   : > { %v1304_v48 = vmul.f32 %v1302_v43, %v1254_v42  ;;  %v1259_v49 = vpop.f32.mrb[15].mxu0 }
 0x76e   : > { %v1305_v26 = vmul.f32 %v1303_v46, %v1256_v45 }
 0x76f   : > { %v1306_v50 = vmul.f32 0.044715, %v1304_v48 }
 0x770   : > { %v1307_v24 = vmul.f32 0.044715, %v1305_v26 }
 0x771   : > { %v1308_v51 = vadd.f32 %v1306_v50, %v1254_v42 }
 0x772   : > { %v1309_v15 = vadd.f32 %v1307_v24, %v1256_v45  ;;  %v1295_v52 = vpop.f32.mrb[16].mxu0 }
 0x773   : > { %v1310_v53 = vmul.f32 0.7978846, %v1308_v51  ;;  %v1297_v54 = vpop.f32.mrb[17].mxu0 }
 0x774   : > { %v1311_v56 = vmul.f32 0.7978846, %v1309_v15  ;;  %v1299_v61 = vpop.f32.mrb[18].mxu0 }
 0x775   : > { %1956 = vtanh.f32 %v1310_v53  ;;  %v1300_v62 = vpop.f32.mrb[19].mxu0 }
 0x776   : > { %1958 = vtanh.f32 %v1311_v56 }
 0x77f   : > { %v1957_v5 = vpop.eup %1956 }
 0x780   : > { %v1959_v19 = vpop.eup %1958  ;;  %v1314_v9 = vadd.f32 1.0, %v1957_v5 }
 0x781   : > { %v1315_v10 = vadd.f32 1.0, %v1959_v19 }
 0x782   : > { %v1316_v11 = vmul.f32 0.5, %v1314_v9 }
 0x783   : > { %v1317_v16 = vmul.f32 0.5, %v1315_v10 }
 0x784   : > { %v1318_v25 = vmul.f32 %v1316_v11, %v1254_v42 }
 0x785   : > { %v1319_v28 = vmul.f32 %v1317_v16, %v1256_v45 }
 0x786   : > { %v2455_v59 = vmul.f32 %v1318_v25, %v1295_v52 }
 0x787   : > { %v2457_v29 = vmul.f32 %v1319_v28, %v1297_v54 }
 0x7f3   : > { %v1160_v30 = vpop.xlane.xlu1 %1159 }
 0x7f4   : > { %vm1161_vm12 = vcmp.eq.f32.partialorder %v2450_v57, %v1160_v30 }
 0x7f5   : > { %v1162_v31 = vsel %vm1161_vm12, %v2278_v60, 8 }
 0x7f6   : > { %v1163_v32 = vsel %vm653_vm3, %v1162_v31, 2147483647 }
 0x7f7   : > { %v1165_v33 = vshra.s32 %v1163_v32, 16  ;;  %v1164_v40 = vand.u32 65535, %v1163_v32 }
 0x7f9   : > { %v1167_v34 = vcvt.s32.f32 %v1165_v33  ;;  %v1166_v42 = vcvt.s32.f32 %v1164_v40 }
 0x7fb   : > { %1168 = vmin.xlane.f32.xlu1 %v1167_v34 }
 0x834   : > { %v1770_v35 = vpop.f32.mrb[16].mxu1 }
 0x835   : > { %v1771_v36 = vpop.f32.mrb[17].mxu1 }
 0x836   : > { %v1772_v37 = vadd.f32 %v1771_v36, %v1770_v35  ;;  %v1773_v38 = vpop.f32.mrb[18].mxu1 }
 0x837   : > { %v1774_v58 = vpop.f32.mrb[19].mxu1 }
 0x838   : > { %v2463_v39 = vadd.f32 %v1772_v37, %v2442_v27 }
 0x888   : > { %v1169_v41 = vpop.xlane.xlu1 %1168 }
 0x889   : > { %vm1170_vm13 = vcmp.eq.f32.partialorder %v1167_v34, %v1169_v41  ;;  %v1175_v45 = vcvt.f32.s32 %v1169_v41 }
 0x88a   : > { %v1171_v43 = vsel %vm1170_vm13, %v1166_v42, inf }
 0x88b   : > { %1172 = vmin.xlane.f32.xlu1 %v1171_v43  ;;  %v1176_v47 = vshll.u32 %v1175_v45, 16 }
 0x918   : > { %v1173_v46 = vpop.xlane.xlu1 %1172 }
 0x919   : > { %v1174_v48 = vcvt.f32.s32 %v1173_v46 }
 0x91b   : > { %v1177_v49 = vadd.s32 %v1176_v47, %v1174_v48  ;;  %v1946_v47 = vld [vmem:[%s2589_s10] sm:$0xff]  }
 0x91d   : > { %vm1178_vm14 = vcmp.eq.s32.totalorder %v2278_v60, %v1177_v49  ;;  %v1947_v49 = vld [vmem:[%s2589_s10 + $0x8] sm:$0xff]  }
 0x91e   : > { %v1179_v26 = vsel %vm1178_vm14, -inf, %v2450_v57 }
 0x91f   : > { %v1180_v27 = vsel %vm653_vm3, %v1179_v26, -inf }
 0x920   : > { %1181 = vmax.xlane.f32.xlu1 %v1180_v27 }
 0x9ad   : > { %v1182_v50 = vpop.xlane.xlu1 %1181 }
 0x9ae   : > { %vm1183_vm15 = vcmp.eq.f32.partialorder %v1179_v26, %v1182_v50  ;;  %v1111_v26 = vpack.c.bf16 %v2463_v39, %v2463_v39 }
 0x9af   : > { %v1184_v24 = vsel %vm1183_vm15, %v2278_v60, 8 }
 0x9b0   : > { %v1185_v51 = vsel %vm653_vm3, %v1184_v24, 2147483647 }
 0x9b1   : > { %v1187_v15 = vshra.s32 %v1185_v51, 16  ;;  %v1186_v53 = vand.u32 65535, %v1185_v51 }
 0x9b3   : > { %v1189_v52 = vcvt.s32.f32 %v1187_v15  ;;  %v1188_v56 = vcvt.s32.f32 %v1186_v53 }
 0x9b5   : > { %1190 = vmin.xlane.f32.xlu1 %v1189_v52 }
 0xa42   : > { %v1191_v54 = vpop.xlane.xlu1 %1190 }
 0xa43   : > { %vm1192_vm4 = vcmp.eq.f32.partialorder %v1189_v52, %v1191_v54  ;;  %v1197_v62 = vcvt.f32.s32 %v1191_v54  ;;  %v1739_v52 = vld [vmem:[%s2590_s11] ss:$0 sm:$0xff] }
 0xa44   : > { %v1193_v61 = vsel %vm1192_vm4, %v1188_v56, inf }
 0xa45   : > { %1194 = vmin.xlane.f32.xlu1 %v1193_v61  ;;  %v1198_v19 = vshll.u32 %v1197_v62, 16 }
 0xad2   : > { %v1195_v5 = vpop.xlane.xlu1 %1194 }
 0xad3   : > { %v1196_v9 = vcvt.f32.s32 %v1195_v5 }
 0xad5   : > { %v1199_v10 = vadd.s32 %v1198_v19, %v1196_v9 }
 0xad7   : > { %vm1200_vm5 = vcmp.eq.s32.totalorder %v2278_v60, %v1199_v10 }
 0xad8   : > { %vm1201_vm6 = vmor %vm1178_vm14, %vm1200_vm5 }
 0xad9   : > { %v1202_v11 = vsel %vm1201_vm6, %v2450_v57, -inf }
 0xada   : > { %v1203_v16 = vsel %vm653_vm3, %v1202_v11, -inf }
 0xadb   : > { %1204 = vmax.xlane.f32.xlu0 %v1203_v16 }
 0xb68   : > { %v1205_v25 = vpop.xlane.xlu0 %1204 }
 0xb69   : > { %v1206_v28 = vsub.f32 %v1202_v11, %v1205_v25 }
 0xb6b   : > { %v1207_v30 = vmul.f32 1.442695, %v1206_v28 }
 0xb6d   : > { %1960 = vpow2.f32 %v1207_v30 }
 0xb6e   : > { %1962 = vlog2.f32 %v2316_v55 }
 0xb77   : > { %v1961_v31 = vpop.eup %1960 }
 0xb78   : > { %v1209_v32 = vsel %vm1201_vm6, %v1961_v31, 0.0  ;;  %v1963_v60 = vpop.eup %1962 }
 0xb79   : > { %v1210_v33 = vsel %vm653_vm3, %v1209_v32, 0.0  ;;  %v712_v57 = vmul.f32 0.6931472, %v1963_v60 }
 0xb7a   : > { %1211 = vadd.xlane.f32.xlu1 %v1210_v33 }
 0xb7b   : > { %v713_v38 = vadd.f32 %v712_v57, %v2296_v44 }
 0xb7d   : > { %v714_v42 = vmul.f32 %v713_v38, %v713_v38 }
 0xc07   : > { %v1212_v34 = vpop.xlane.xlu1 %1211 }
 0xc08   : > { %1964 = vrcp.f32 %v1212_v34 }
 0xc09   : > { %1966 = vlog2.f32 %v1212_v34 }
 0xc12   : > { %v1965_v35 = vpop.eup %1964 }
 0xc13   : > { %v1967_v36 = vpop.eup %1966  ;;  %v1214_v37 = vmul.f32 %v1965_v35, %v1209_v32 }
 0xc14   : > { %v1216_v58 = vmul.f32 0.6931472, %v1967_v36 }
 0xc15   : > { %v1324_v40 = vpack.c.bf16 %v1214_v37, %v1214_v37 }
 0xc16   : > { %v1217_v41 = vadd.f32 %v1216_v58, %v1205_v25 }
 0xc17   : > { %1731 = vmatmul.mubr.msk.bf16.vlgmr.msra.gmra.mrb[20].mxu0 %vm653_vm3, %v1324_v40  ;;  %1846 = vmatmul.mubr.msk.bf16.vlgmr.msra.gmra.mrb[20].mxu1 %vm653_vm3, %v1324_v40 }
 0xc18   : > { %v1218_v55 = vmul.f32 %v1217_v41, %v1217_v41  ;;  %1782 = vmatpush3.bf16.msra.mxu0 %v2322_v63  ;;  %1853 = vmatprep.mubr.msk.bf16.mxu1 %vm2033_vm0, %v2032_v1  ;;  %v1322_v63 = vmul.f32 %v2455_v59, %v2436_v12  ;;  %v1945_v12 = vld [vmem:[%s2589_s10 + $0x18] sm:$0xff]  }
 0xc19   : > { %1783 = vmatprep.subr.bf16.mxu0 %v2327_v0 }
 0xc1a   : > { %v1219_v44 = vadd.f32 %v1218_v55, %v714_v42 }
 0xc1c   : > { %1574 = vst.msk [vmem:[%s446_s16] sm:$0xff] %vm1573_vm7, %v1219_v44  ;;  %1784 = vmatpush3.bf16.msra.mxu0 %v2339_v2  ;;  %s430_s16 = sand.u32 1, %s2022_s26  }
 0xc1d   : > { %1785 = vmatprep.subr.bf16.mxu0 %v2345_v4  ;;  %v1323_v4 = vmul.f32 %v2457_v29, %v2438_v13  ;;  %s1683_s24 = sshll.u32 %s430_s16, 3  ;;  %s1576_s29 = scalar_lea.sflag [#allocation3], %s430_s16 }
 0xc1e   : > { %s432_s17 = scalar_lea.vmem [#allocation2], %s1683_s24 }
 0xc1f   : > { %s1593_s23 = sshll.u32 %s432_s17, 4  ;;  %s2538_s23 = int_to_ptr.vmem [resolvable:$true] %s1593_s23 }
 0xc20   : > { %1786 = vmatpush3.bf16.msra.mxu0 %v2353_v3  ;;  %s1968_s24 = scalar_lea.vmem %s2538_s23, 128  ;;  %p1975_p0 = scmp.lt.s32.totalorder %s2538_s23, %s1973_s21 }
 0xc21   : > { %1787 = vmatprep.subr.bf16.mxu0 %v2359_v6  ;;  %p1969_p11 = scmp.ne.s32.totalorder %s2538_s23, %s1968_s24  ;;  %p1976_p1 = scmp.lt.s32.totalorder %s1974_s1, %s1968_s24 }
 0xc23   : > { %p1970_p12 = pnand %p1969_p11, %p2145_p5  ;;  %p1977_p2 = por %p1976_p1, %p1975_p0 }
 0xc24   : > { %1788 = vmatpush3.bf16.msra.mxu0 %v2369_v7 }
 0xc25   : > { %1789 = vmatprep.subr.bf16.mxu0 %v2375_v8  ;;  %p1971_p13 = pneg %p1970_p12 }
 0xc27   : > { %p1978_p3 = pnand %p1977_p2, %p1971_p13 }
 0xc28   : > { %1790 = vmatpush3.bf16.msra.mxu0 %v2383_v14 }
 0xc29   : > { %1791 = vmatprep.subr.bf16.mxu0 %v2389_v17 }
 0xc2c   : > { %1792 = vmatpush3.bf16.msra.mxu0 %v2399_v18 }
 0xc2d   : > { %1793 = vmatprep.subr.bf16.mxu0 %v2405_v20 }
 0xc30   : > { %1794 = vmatpush3.bf16.msra.mxu0 %v2416_v21 }
 0xc31   : > { %1795 = vmatprep.subr.bf16.mxu0 %v2422_v22 }
 0xc34   : > { %1796 = vmatpush3.bf16.msra.mxu0 %v2427_v23  ;;  %v1944_v23 = vld [vmem:[%s2589_s10 + $0x10] sm:$0xff]  }
 0xc35   : > { %1850 = vmatpush3.bf16.msra.mxu1 %v1944_v23 }
 0xc36   : > { %1851 = vmatprep.subr.bf16.mxu1 %v2032_v1 }
 0xc39   : > { %1852 = vmatpush3.bf16.msra.mxu1 %v1945_v12 }
 0xc3a   : > { %1857 = vmatprep.subr.bf16.mxu1 %v2032_v1 }
 0xcea   : > { %v1362_v0 = vpop.f32.mrb[20].mxu0  ;;  %v1407_v2 = vpop.f32.mrb[20].mxu1 }
 0xceb   : > { %v1369_v3 = vmul.f32 %v1362_v0, %v1322_v63  ;;  %v1364_v6 = vpop.f32.mrb[21].mxu0  ;;  %v1847_v7 = vpop.f32.mrb[21].mxu1 }
 0xcec   : > { %v1370_v8 = vmul.f32 %v1364_v6, %v1323_v4  ;;  %v1366_v14 = vpop.f32.mrb[22].mxu0  ;;  %v1410_v17 = vpop.f32.mrb[22].mxu1 }
 0xced   : > { %v1367_v18 = vpop.f32.mrb[23].mxu0  ;;  %v1848_v20 = vpop.f32.mrb[23].mxu1  ;;  %v1371_v22 = vpack.c.bf16 %v1369_v3, %v1369_v3 }
 0xcee   : > { %v1372_v21 = vpack.c.bf16 %v1370_v8, %v1370_v8 }
 0xcf0   : > { %1445 = vmatprep.mubr.bf16.mxu0 %v1372_v21 }
 0xcf1   : > { %1446 = vmatmul.mubr.bf16.vlgmr.msra.gmra.mrb[24].mxu0 %v1371_v22 }
 0xdc4   : > { %v1797_v13 = vpop.f32.mrb[24].mxu0 }
 0xdc5   : > { %v1798_v59 = vpop.f32.mrb[25].mxu0 }
 0xdc6   : > { %v1799_v29 = vadd.f32 %v1798_v59, %v1797_v13  ;;  %v1800_v43 = vpop.f32.mrb[26].mxu0 }
 0xdc7   : > { %v1801_v45 = vpop.f32.mrb[27].mxu0 }
 0xdc8   : > { %v1448_v46 = vadd.f32 %v1799_v29, %v1407_v2 }
 0xdca   : > { %v1453_v48 = vpack.c.bf16 %v1448_v46, %v1448_v46 }
 0xdcc   : > { %1854 = vmatmul.mubr.msk.bf16.vlgmr.msra.gmra.mrb[24].mxu1 %vm609_vm2, %v1453_v48 }
 0xdcd   : > { %1858 = vmatpush3.bf16.msra.mxu1 %v1946_v47  ;;  %1861 = vmatprep.mubr.msk.bf16.mxu1 %vm2033_vm0, %v2032_v1 }
 0xdce   : > { %1859 = vmatprep.subr.bf16.mxu1 %v2032_v1 }
 0xdd1   : > { %1860 = vmatpush3.bf16.msra.mxu1 %v1947_v49 }
 0xdd4   : > { %1862 = vmatmul.mubr.msk.bf16.vlgmr.msra.gmra.mrb[28].mxu1 %vm609_vm2, %v1111_v26 }
 0xe9f   : > { %v1503_v27 = vpop.f32.mrb[24].mxu1 }
 0xea0   : > { %v1855_v50 = vpop.f32.mrb[25].mxu1 }
 0xea1   : > { %v1506_v24 = vpop.f32.mrb[26].mxu1 }
 0xea2   : > { %v1856_v51 = vpop.f32.mrb[27].mxu1 }
 0xea7   : > { %v1558_v15 = vpop.f32.mrb[28].mxu1 }
 0xea8   : > { %v1559_v1 = vadd.f32 %v1558_v15, %v1503_v27  ;;  %v1863_v53 = vpop.f32.mrb[29].mxu1 }
 0xea9   : > { %v1561_v39 = vpop.f32.mrb[30].mxu1 }
 0xeaa   : > { %v1571_v54 = vadd.f32 %v1739_v52, %v1559_v1  ;;  %v1864_v56 = vpop.f32.mrb[31].mxu1 }
 0xeac   : > { %1572 = vst.msk [vmem:[%s432_s17] sm:$0xff] %vm488_vm1, %v1571_v54 }
 0xead   : > { %1981 = shalt.err (!%p1978_p3)
}
 0xeae   : > { %s1982_s16 = scalar_lea.hbm %s2536_s0, 128  ;;  %s1986_s30 = scalar_lea.hbm %s2591_s12, 256 }
 0xeaf   : > { %p1983_p4 = scmp.ne.s32.totalorder %s2536_s0, %s1982_s16  ;;  %p1987_p9 = scmp.lt.u32.totalorder %s2536_s0, %s2591_s12 }
 0xeb0   : > { %p1988_p10 = scmp.lt.u32.totalorder %s1986_s30, %s1982_s16  ;;  %p1990_p12 = scmp.lt.u32.totalorder %s1982_s16, %s2536_s0 }
 0xeb1   : > { %p1984_p7 = pnand %p1983_p4, %p2145_p5 }
 0xeb2   : > { %p1989_p11 = por %p1988_p10, %p1987_p9 }
 0xeb3   : > { %p1985_p8 = pneg %p1984_p7 }
 0xeb4   : > { %p1991_p13 = por %p1990_p12, %p1989_p11 }
 0xeb6   : > { %p1992_p0 = pnand %p1991_p13, %p1985_p8 }
 0xeb8   : > { %1995 = shalt.err (!%p1992_p0)
}
 0xeb9   : > { %1865 = dma.vmem_to_hbm [thread:$0]  (%p2145_p5), %s2538_s23, 128, %s2536_s0, %s1576_s29  }
 0xeba PF: > { %p1871_p1 = scmp.ge.s32.totalorder %s2030_s28, 2  ;;  %s1608_s1 = sand.u32 1, %s2018_s25  }
 0xebb   : > { %s1609_s24 = scalar_lea.sflag [#allocation3], %s1608_s1 }
 0xebc   : > { %p1868_p2 = pnand %p1871_p1, %p2149_p6 }
 0xebe   : > { %2013 = dma.done.wait (!%p1868_p2), %s1609_s24, 128  }
 0xebf   : > { %2015 = vsyncadd (!%p1868_p2), %s1609_s24, 4294967168  ;;  %s2600_s21 = sld [smem:[#allocation5_spill]]  ;;  %p24_p3 = scmp.ge.s32.totalorder %s2132_s14, 4  }
 0xec0   : > { %s2601_s25 = smov %s2022_s26  ;;  %s2602_s26 = smov %s2026_s27 }
 0xec1   : > { %s2604_s28 = smov %s2132_s14  ;;  %26 = sbr.rel (!%p24_p3) target bundleno = 6 (0x6), region = 115 }
 0xec5   : > { %s2603_s27 = smov %s2600_s21 }
 0xec8   :  { %1621 = vsyncpa [#allocation3], 1 }
 0xec9   :  { %1623 = vsyncpa [#allocation3 + $0x1], 1 }

</bundles_post_ra>
